<compile_context>
chip_gen: v6e
topology: v6e:2x2x1
jax: 0.10.0
libtpu: 0.0.40
codegen_flags: <defaults>
</compile_context>

<pallas_src>
import functools

import jax
import jax.numpy as jnp
from jax.experimental import pallas as pl
from jax.experimental.pallas import tpu as pltpu

LANE = 128
SUBLANE = 8


def _round_up(n, m):
    return -(-n // m) * m


# ---------------------------------------------------------------------------
# Shared LSTM-cell math (traced inside the kernels).
# ---------------------------------------------------------------------------
def _lstm_cell(x, h, c, w_x, w_h, b_g, hp):
    # Two accumulating MXU matmuls (no xh concatenation needed).
    gates = (jnp.dot(x, w_x, preferred_element_type=jnp.float32)
             + jnp.dot(h, w_h, preferred_element_type=jnp.float32)
             + b_g)
    # Lane-aligned 128-wide gate slices (Hp == 128): offsets 0/128/256/384.
    i_g = jax.nn.sigmoid(gates[:, 0 * hp:1 * hp])
    f_g = jax.nn.sigmoid(gates[:, 1 * hp:2 * hp])
    g_g = jnp.tanh(gates[:, 2 * hp:3 * hp])
    o_g = jax.nn.sigmoid(gates[:, 3 * hp:4 * hp])
    c_new = f_g * c + i_g * g_g
    h_new = o_g * jnp.tanh(c_new)
    return h_new, c_new


# ---------------------------------------------------------------------------
# Fused T-step rollout kernel: grid=(T,), weights resident, state in the
# VMEM-resident final-state output blocks (single HBM writeback at the end).
# ---------------------------------------------------------------------------
def rollout_kernel(x_ref, h0_ref, c0_ref, w_x_ref, w_h_ref, b_g_ref,
                   w_fc_ref, b_fc_ref,
                   out_ref, h_ref, c_ref, *, hp):
    t = pl.program_id(0)

    @pl.when(t == 0)
    def _():
        h_ref[...] = h0_ref[...]
        c_ref[...] = c0_ref[...]

    x = x_ref[0]                                   # (Bp, D)
    h_new, c_new = _lstm_cell(x, h_ref[...], c_ref[...],
                              w_x_ref[...], w_h_ref[...], b_g_ref[...], hp)
    h_ref[...] = h_new                             # stays in VMEM across steps
    c_ref[...] = c_new

    # fc head; output block is lane-dense (Op == 128) and streamed per step.
    out_ref[0] = (jnp.dot(h_new, w_fc_ref[...],
                          preferred_element_type=jnp.float32) + b_fc_ref[...])


# ---------------------------------------------------------------------------
# Single-step kernel (module-equivalent forward), padded activations.
# ---------------------------------------------------------------------------
def step_kernel(x_ref, h_ref, c_ref, w_x_ref, w_h_ref, b_g_ref,
                w_fc_ref, b_fc_ref, out_ref, h_out_ref, c_out_ref, *, hp):
    h_new, c_new = _lstm_cell(x_ref[...], h_ref[...], c_ref[...],
                              w_x_ref[...], w_h_ref[...], b_g_ref[...], hp)
    out_ref[...] = (jnp.dot(h_new, w_fc_ref[...],
                            preferred_element_type=jnp.float32) + b_fc_ref[...])
    h_out_ref[...] = h_new
    c_out_ref[...] = c_new


# ---------------------------------------------------------------------------
# One-time weight packing (transpose + pad + fuse biases).  Call ONCE.
# ---------------------------------------------------------------------------
def pack_params(params, *, lane=LANE):
    w_ih, w_hh, b_ih, b_hh, w_fc, b_fc = params
    H = w_hh.shape[1]
    O = w_fc.shape[0]
    Hp = _round_up(H, lane)
    Op = _round_up(O, lane)

    def pad_gate_rows(w):            # (4H, K) -> (4Hp, K), zero-pad per gate
        K = w.shape[1]
        return jnp.pad(w.reshape(4, H, K),
                       ((0, 0), (0, Hp - H), (0, 0))).reshape(4 * Hp, K)

    w_x = pad_gate_rows(w_ih).T                                    # (D, 4Hp)
    w_h = jnp.pad(pad_gate_rows(w_hh), ((0, 0), (0, Hp - H))).T    # (Hp, 4Hp)

    def pad_gate_bias(b):            # (4H,) -> (1, 4Hp), zero-pad per gate
        return jnp.pad(b.reshape(4, H), ((0, 0), (0, Hp - H))).reshape(1, 4 * Hp)

    b_gates = pad_gate_bias(b_ih) + pad_gate_bias(b_hh)            # folded bias

    w_fc_p = jnp.pad(w_fc, ((0, Op - O), (0, Hp - H))).T           # (Hp, Op)
    b_fc_p = jnp.pad(b_fc, (0, Op - O)).reshape(1, Op)             # (1, Op)
    return (w_x, w_h, b_gates, w_fc_p, b_fc_p)


# ---------------------------------------------------------------------------
# Fused T-step rollout: ONE pallas_call for the whole sequence.
# ---------------------------------------------------------------------------
@functools.partial(jax.jit, static_argnames=("out_features", "hidden"))
def controller_rollout(xs, prev_state, packed, *, out_features, hidden):
    """Apply Controller.forward sequentially over xs[t], t = 0..T-1, in a
    single pallas_call.  Weights are loaded into VMEM once; h/c never touch
    HBM between steps; pad/slice of activations happens once per rollout."""
    h0, c0 = prev_state
    w_x, w_h, b_g, w_fc_p, b_fc_p = packed
    T, B, D = xs.shape
    Hp, Op = w_fc_p.shape
    H = hidden
    Bp = max(_round_up(B, SUBLANE), SUBLANE)       # full (8,128) output tiles

    xs_p = jnp.pad(xs, ((0, 0), (0, Bp - B), (0, 0)))
    h0_p = jnp.pad(h0, ((0, Bp - B), (0, Hp - H)))
    c0_p = jnp.pad(c0, ((0, Bp - B), (0, Hp - H)))

    const2 = lambda t: (0, 0)                      # resident (loaded once)

    outs, h_fin, c_fin = pl.pallas_call(
        functools.partial(rollout_kernel, hp=Hp),
        out_shape=(
            jax.ShapeDtypeStruct((T, Bp, Op), jnp.float32),
            jax.ShapeDtypeStruct((Bp, Hp), jnp.float32),
            jax.ShapeDtypeStruct((Bp, Hp), jnp.float32),
        ),
        grid=(T,),
        in_specs=[
            pl.BlockSpec((1, Bp, D), lambda t: (t, 0, 0)),   # x  (streamed)
            pl.BlockSpec((Bp, Hp), const2),                  # h0 (resident)
            pl.BlockSpec((Bp, Hp), const2),                  # c0 (resident)
            pl.BlockSpec((D, 4 * Hp), const2),               # w_x
            pl.BlockSpec((Hp, 4 * Hp), const2),              # w_h
            pl.BlockSpec((1, 4 * Hp), const2),               # b_gates
            pl.BlockSpec((Hp, Op), const2),                  # w_fc
            pl.BlockSpec((1, Op), const2),                   # b_fc
        ],
        out_specs=(
            pl.BlockSpec((1, Bp, Op), lambda t: (t, 0, 0)),  # out (streamed)
            pl.BlockSpec((Bp, Hp), const2),                  # final h (resident)
            pl.BlockSpec((Bp, Hp), const2),                  # final c (resident)
        ),
        # Reuse the initial-state HBM buffers for the final state.
        input_output_aliases={1: 1, 2: 2},
        compiler_params=pltpu.CompilerParams(
            dimension_semantics=("arbitrary",)),             # serial recurrence
    )(xs_p, h0_p, c0_p, w_x, w_h, b_g, w_fc_p, b_fc_p)

    return (outs[:, :B, :out_features],
            (h_fin[:B, :H], c_fin[:B, :H]))


# ---------------------------------------------------------------------------
# Single step on padded activations (state updates in place via aliasing).
# ---------------------------------------------------------------------------
@jax.jit
def controller_step_padded(x_p, state_p, packed):
    h_p, c_p = state_p
    w_x, w_h, b_g, w_fc_p, b_fc_p = packed
    Bp = h_p.shape[0]
    Hp, Op = w_fc_p.shape

    vmem = pl.BlockSpec(memory_space=pltpu.MemorySpace.VMEM)
    out_p, h_new, c_new = pl.pallas_call(
        functools.partial(step_kernel, hp=Hp),
        out_shape=(
            jax.ShapeDtypeStruct((Bp, Op), jnp.float32),
            jax.ShapeDtypeStruct((Bp, Hp), jnp.float32),
            jax.ShapeDtypeStruct((Bp, Hp), jnp.float32),
        ),
        in_specs=[vmem] * 8,
        out_specs=(vmem, vmem, vmem),
        input_output_aliases={1: 1, 2: 2},   # h and c update in place
    )(x_p, h_p, c_p, w_x, w_h, b_g, w_fc_p, b_fc_p)
    return out_p, (h_new, c_new)


# ---------------------------------------------------------------------------
# Module-equivalent single-step forward (unpadded interface).  For rollouts,
# prefer controller_rollout (one pallas_call) or keep state padded and drive
# controller_step_padded directly so the in-place aliasing is not defeated.
# ---------------------------------------------------------------------------
@functools.partial(jax.jit, static_argnames=("out_features", "hidden"))
def controller_forward(x, prev_state, packed, *, out_features, hidden):
    h, c = prev_state
    w_x, w_h, b_g, w_fc_p, b_fc_p = packed
    B, H = h.shape
    Hp, Op = w_fc_p.shape
    Bp = max(_round_up(B, SUBLANE), SUBLANE)

    x_p = jnp.pad(x, ((0, Bp - B), (0, 0)))
    h_p = jnp.pad(h, ((0, Bp - B), (0, Hp - H)))
    c_p = jnp.pad(c, ((0, Bp - B), (0, Hp - H)))
    out_p, (h_new_p, c_new_p) = controller_step_padded(x_p, (h_p, c_p), packed)
    return (out_p[:B, :out_features],
            (h_new_p[:B, :H], c_new_p[:B, :H]))


# ---------------------------------------------------------------------------
# Pure-JAX reference mirroring torch.nn.LSTMCell + Linear.
# ---------------------------------------------------------------------------
def controller_reference(x, prev_state, params):
    h, c = prev_state
    w_ih, w_hh, b_ih, b_hh, w_fc, b_fc = params
    H = h.shape[1]
    gates = x @ w_ih.T + b_ih + h @ w_hh.T + b_hh
    i_g = jax.nn.sigmoid(gates[:, 0 * H:1 * H])
    f_g = jax.nn.sigmoid(gates[:, 1 * H:2 * H])
    g_g = jnp.tanh(gates[:, 2 * H:3 * H])
    o_g = jax.nn.sigmoid(gates[:, 3 * H:4 * H])
    c_new = f_g * c + i_g * g_g
    h_new = o_g * jnp.tanh(c_new)
    out = h_new @ w_fc.T + b_fc
    return out, (h_new, c_new)


def init_params(key, in_features, hidden, out_features):
    """PyTorch-style shapes/init: uniform(-1/sqrt(hidden), 1/sqrt(hidden))."""
    k = 1.0 / jnp.sqrt(jnp.float32(hidden))
    ks = jax.random.split(key, 6)
    w_ih = jax.random.uniform(ks[0], (4 * hidden, in_features), jnp.float32, -k, k)
    w_hh = jax.random.uniform(ks[1], (4 * hidden, hidden), jnp.float32, -k, k)
    b_ih = jax.random.uniform(ks[2], (4 * hidden,), jnp.float32, -k, k)
    b_hh = jax.random.uniform(ks[3], (4 * hidden,), jnp.float32, -k, k)
    w_fc = jax.random.uniform(ks[4], (out_features, hidden), jnp.float32, -k, k)
    b_fc = jax.random.uniform(ks[5], (out_features,), jnp.float32, -k, k)
    return (w_ih, w_hh, b_ih, b_hh, w_fc, b_fc)


if __name__ == "__main__":
    input_size = 8
    output_size = 8
    controller_size = 100
    memory_size = 24
    batch = 2
    T = 8

    key = jax.random.PRNGKey(0)
    k_x, k_h, k_c, k_p = jax.random.split(key, 4)

    D = input_size + memory_size
    xs = jax.random.normal(k_x, (T, batch, D), jnp.float32)
    h0 = jax.random.normal(k_h, (batch, controller_size), jnp.float32)
    c0 = jax.random.normal(k_c, (batch, controller_size), jnp.float32)
    params = init_params(k_p, D, controller_size, output_size)

    # Weight packing happens ONCE, outside the per-step / per-rollout path.
    packed = jax.block_until_ready(pack_params(params))

    # ---- Fused T-step rollout: one pallas_call, weights resident in VMEM ----
    outs, (hT, cT) = controller_rollout(xs, (h0, c0), packed,
                                        out_features=output_size,
                                        hidden=controller_size)
    jax.block_until_ready((outs, hT, cT))

    # Reference rollout.
    h_r, c_r = h0, c0
    outs_r = []
    for t in range(T):
        o_r, (h_r, c_r) = controller_reference(xs[t], (h_r, c_r), params)
        outs_r.append(o_r)
    outs_r = jnp.stack(outs_r)

    assert outs.shape == (T, batch, output_size)
    assert hT.shape == (batch, controller_size)
    assert cT.shape == (batch, controller_size)
    assert jnp.allclose(outs, outs_r, atol=3e-5, rtol=1e-5)
    assert jnp.allclose(hT, h_r, atol=3e-5, rtol=1e-5)
    assert jnp.allclose(cT, c_r, atol=3e-5, rtol=1e-5)

    # ---- Module-equivalent single-step forward (uses the aliased step) ----
    out1, (h1, c1) = controller_forward(xs[0], (h0, c0), packed,
                                        out_features=output_size,
                                        hidden=controller_size)
    jax.block_until_ready((out1, h1, c1))
    out1_r, (h1_r, c1_r) = controller_reference(xs[0], (h0, c0), params)
    assert out1.shape == (batch, output_size)
    assert jnp.allclose(out1, out1_r, atol=1e-5, rtol=1e-5)
    assert jnp.allclose(h1, h1_r, atol=1e-5, rtol=1e-5)
    assert jnp.allclose(c1, c1_r, atol=1e-5, rtol=1e-5)

    print("KERNEL_OK")
</pallas_src>

<mosaic_0001>
module attributes {stable_mosaic.version = 11 : i64} {
  func.func @rollout_kernel(%arg0: i32, %arg1: memref<1x8x32xf32, #tpu.memory_space<vmem>>, %arg2: memref<8x128xf32, #tpu.memory_space<vmem>>, %arg3: memref<8x128xf32, #tpu.memory_space<vmem>>, %arg4: memref<32x512xf32, #tpu.memory_space<vmem>>, %arg5: memref<128x512xf32, #tpu.memory_space<vmem>>, %arg6: memref<1x512xf32, #tpu.memory_space<vmem>>, %arg7: memref<128x128xf32, #tpu.memory_space<vmem>>, %arg8: memref<1x128xf32, #tpu.memory_space<vmem>>, %arg9: memref<1x8x128xf32, #tpu.memory_space<vmem>>, %arg10: memref<8x128xf32, #tpu.memory_space<vmem>>, %arg11: memref<8x128xf32, #tpu.memory_space<vmem>>) attributes {dimension_semantics = [#tpu.dimension_semantics<arbitrary>], iteration_bounds = array<i64: 8>, scalar_prefetch = 0 : i64, scratch_operands = 0 : i64, tpu.core_type = #tpu.core_type<tc>, window_params = [{transform_indices = @transform_0, window_bounds = array<i64: 1, 8, 32>}, {pipeline_mode = #tpu.pipeline_mode<synchronous>, transform_indices = @transform_1, window_bounds = array<i64: 8, 128>}, {pipeline_mode = #tpu.pipeline_mode<synchronous>, transform_indices = @transform_2, window_bounds = array<i64: 8, 128>}, {pipeline_mode = #tpu.pipeline_mode<synchronous>, transform_indices = @transform_3, window_bounds = array<i64: 32, 512>}, {pipeline_mode = #tpu.pipeline_mode<synchronous>, transform_indices = @transform_4, window_bounds = array<i64: 128, 512>}, {pipeline_mode = #tpu.pipeline_mode<synchronous>, transform_indices = @transform_5, window_bounds = array<i64: 1, 512>}, {pipeline_mode = #tpu.pipeline_mode<synchronous>, transform_indices = @transform_6, window_bounds = array<i64: 128, 128>}, {pipeline_mode = #tpu.pipeline_mode<synchronous>, transform_indices = @transform_7, window_bounds = array<i64: 1, 128>}, {transform_indices = @transform_8, window_bounds = array<i64: 1, 8, 128>}, {pipeline_mode = #tpu.pipeline_mode<synchronous>, transform_indices = @transform_9, window_bounds = array<i64: 8, 128>}, {pipeline_mode = #tpu.pipeline_mode<synchronous>, transform_indices = @transform_10, window_bounds = array<i64: 8, 128>}]} {
    %c0_i32 = arith.constant 0 : i32
    %0 = arith.cmpi eq, %arg0, %c0_i32 : i32
    %1 = arith.extui %0 : i1 to i32
    %c0_i32_0 = arith.constant 0 : i32
    %2 = arith.cmpi ne, %1, %c0_i32_0 : i32
    scf.if %2 {
      %c0_29 = arith.constant 0 : index
      %c0_30 = arith.constant 0 : index
      %50 = vector.load %arg2[%c0_29, %c0_30] : memref<8x128xf32, #tpu.memory_space<vmem>>, vector<8x128xf32>
      %c0_31 = arith.constant 0 : index
      %c0_32 = arith.constant 0 : index
      %51 = vector.load %arg10[%c0_31, %c0_32] : memref<8x128xf32, #tpu.memory_space<vmem>>, vector<8x128xf32>
      tpu.vector_store %arg10[%c0_31, %c0_32], %50 {strides = array<i32>} : memref<8x128xf32, #tpu.memory_space<vmem>>, vector<8x128xf32>,
      %c0_33 = arith.constant 0 : index
      %c0_34 = arith.constant 0 : index
      %52 = vector.load %arg3[%c0_33, %c0_34] : memref<8x128xf32, #tpu.memory_space<vmem>>, vector<8x128xf32>
      %c0_35 = arith.constant 0 : index
      %c0_36 = arith.constant 0 : index
      %53 = vector.load %arg11[%c0_35, %c0_36] : memref<8x128xf32, #tpu.memory_space<vmem>>, vector<8x128xf32>
      tpu.vector_store %arg11[%c0_35, %c0_36], %52 {strides = array<i32>} : memref<8x128xf32, #tpu.memory_space<vmem>>, vector<8x128xf32>,
    } else {
    }
    %c0 = arith.constant 0 : index
    %c0_1 = arith.constant 0 : index
    %c0_2 = arith.constant 0 : index
    %3 = vector.load %arg1[%c0, %c0_1, %c0_2] : memref<1x8x32xf32, #tpu.memory_space<vmem>>, vector<1x8x32xf32>
    %4 = vector.shape_cast %3 : vector<1x8x32xf32> to vector<8x32xf32>
    %c0_3 = arith.constant 0 : index
    %c0_4 = arith.constant 0 : index
    %5 = vector.load %arg10[%c0_3, %c0_4] : memref<8x128xf32, #tpu.memory_space<vmem>>, vector<8x128xf32>
    %c0_5 = arith.constant 0 : index
    %c0_6 = arith.constant 0 : index
    %6 = vector.load %arg11[%c0_5, %c0_6] : memref<8x128xf32, #tpu.memory_space<vmem>>, vector<8x128xf32>
    %c0_7 = arith.constant 0 : index
    %c0_8 = arith.constant 0 : index
    %7 = vector.load %arg4[%c0_7, %c0_8] : memref<32x512xf32, #tpu.memory_space<vmem>>, vector<32x512xf32>
    %c0_9 = arith.constant 0 : index
    %c0_10 = arith.constant 0 : index
    %8 = vector.load %arg5[%c0_9, %c0_10] : memref<128x512xf32, #tpu.memory_space<vmem>>, vector<128x512xf32>
    %c0_11 = arith.constant 0 : index
    %c0_12 = arith.constant 0 : index
    %9 = vector.load %arg6[%c0_11, %c0_12] : memref<1x512xf32, #tpu.memory_space<vmem>>, vector<1x512xf32>
    %cst = arith.constant dense<0.000000e+00> : vector<8x512xf32>
    %10 = tpu.matmul %4, %7, %cst {dimension_numbers = #tpu.dot_dimension_numbers<[1], [0], [0], [1], [0, 0, 1, 1], [], []>} : vector<8x32xf32>, vector<32x512xf32>, vector<8x512xf32> -> vector<8x512xf32>
    %cst_13 = arith.constant dense<0.000000e+00> : vector<8x512xf32>
    %11 = tpu.matmul %5, %8, %cst_13 {dimension_numbers = #tpu.dot_dimension_numbers<[1], [0], [0], [1], [0, 0, 1, 1], [], []>} : vector<8x128xf32>, vector<128x512xf32>, vector<8x512xf32> -> vector<8x512xf32>
    %12 = arith.addf %10, %11 : vector<8x512xf32>
    %13 = vector.broadcast %9 : vector<1x512xf32> to vector<8x512xf32>
    %14 = arith.addf %12, %13 : vector<8x512xf32>
    %15 = vector.extract_strided_slice %14 {offsets = [0, 0], sizes = [8, 128], strides = [1, 1]} : vector<8x512xf32> to vector<8x128xf32>
    %16 = arith.negf %15 : vector<8x128xf32>
    %17 = math.exp %16 : vector<8x128xf32>
    %cst_14 = arith.constant 1.000000e+00 : f32
    %18 = vector.broadcast %cst_14 : f32 to vector<8x128xf32>
    %19 = arith.addf %18, %17 : vector<8x128xf32>
    %20 = arith.divf %18, %19 : vector<8x128xf32>
    %21 = vector.extract_strided_slice %14 {offsets = [0, 128], sizes = [8, 128], strides = [1, 1]} : vector<8x512xf32> to vector<8x128xf32>
    %22 = arith.negf %21 : vector<8x128xf32>
    %23 = math.exp %22 : vector<8x128xf32>
    %cst_15 = arith.constant 1.000000e+00 : f32
    %24 = vector.broadcast %cst_15 : f32 to vector<8x128xf32>
    %25 = arith.addf %24, %23 : vector<8x128xf32>
    %26 = arith.divf %24, %25 : vector<8x128xf32>
    %27 = vector.extract_strided_slice %14 {offsets = [0, 256], sizes = [8, 128], strides = [1, 1]} : vector<8x512xf32> to vector<8x128xf32>
    %28 = math.tanh %27 : vector<8x128xf32>
    %29 = vector.extract_strided_slice %14 {offsets = [0, 384], sizes = [8, 128], strides = [1, 1]} : vector<8x512xf32> to vector<8x128xf32>
    %30 = arith.negf %29 : vector<8x128xf32>
    %31 = math.exp %30 : vector<8x128xf32>
    %cst_16 = arith.constant 1.000000e+00 : f32
    %32 = vector.broadcast %cst_16 : f32 to vector<8x128xf32>
    %33 = arith.addf %32, %31 : vector<8x128xf32>
    %34 = arith.divf %32, %33 : vector<8x128xf32>
    %35 = arith.mulf %26, %6 : vector<8x128xf32>
    %36 = arith.mulf %20, %28 : vector<8x128xf32>
    %37 = arith.addf %35, %36 : vector<8x128xf32>
    %38 = math.tanh %37 : vector<8x128xf32>
    %39 = arith.mulf %34, %38 : vector<8x128xf32>
    %c0_17 = arith.constant 0 : index
    %c0_18 = arith.constant 0 : index
    %40 = vector.load %arg10[%c0_17, %c0_18] : memref<8x128xf32, #tpu.memory_space<vmem>>, vector<8x128xf32>
    tpu.vector_store %arg10[%c0_17, %c0_18], %39 {strides = array<i32>} : memref<8x128xf32, #tpu.memory_space<vmem>>, vector<8x128xf32>,
    %c0_19 = arith.constant 0 : index
    %c0_20 = arith.constant 0 : index
    %41 = vector.load %arg11[%c0_19, %c0_20] : memref<8x128xf32, #tpu.memory_space<vmem>>, vector<8x128xf32>
    tpu.vector_store %arg11[%c0_19, %c0_20], %37 {strides = array<i32>} : memref<8x128xf32, #tpu.memory_space<vmem>>, vector<8x128xf32>,
    %c0_21 = arith.constant 0 : index
    %c0_22 = arith.constant 0 : index
    %42 = vector.load %arg7[%c0_21, %c0_22] : memref<128x128xf32, #tpu.memory_space<vmem>>, vector<128x128xf32>
    %cst_23 = arith.constant dense<0.000000e+00> : vector<8x128xf32>
    %43 = tpu.matmul %39, %42, %cst_23 {dimension_numbers = #tpu.dot_dimension_numbers<[1], [0], [0], [1], [0, 0, 1, 1], [], []>} : vector<8x128xf32>, vector<128x128xf32>, vector<8x128xf32> -> vector<8x128xf32>
    %c0_24 = arith.constant 0 : index
    %c0_25 = arith.constant 0 : index
    %44 = vector.load %arg8[%c0_24, %c0_25] : memref<1x128xf32, #tpu.memory_space<vmem>>, vector<1x128xf32>
    %45 = vector.broadcast %44 : vector<1x128xf32> to vector<8x128xf32>
    %46 = arith.addf %43, %45 : vector<8x128xf32>
    %c0_26 = arith.constant 0 : index
    %c0_27 = arith.constant 0 : index
    %c0_28 = arith.constant 0 : index
    %47 = vector.load %arg9[%c0_26, %c0_27, %c0_28] : memref<1x8x128xf32, #tpu.memory_space<vmem>>, vector<1x8x128xf32>
    %48 = vector.shape_cast %47 : vector<1x8x128xf32> to vector<8x128xf32>
    %49 = vector.shape_cast %46 : vector<8x128xf32> to vector<1x8x128xf32>
    tpu.vector_store %arg9[%c0_26, %c0_27, %c0_28], %49 {strides = array<i32>} : memref<1x8x128xf32, #tpu.memory_space<vmem>>, vector<1x8x128xf32>,
    return
  }
  func.func @transform_0(%arg0: i32) -> (i32, i32, i32) {
    %c0_i32 = arith.constant 0 : i32
    %c0_i32_0 = arith.constant 0 : i32
    %c0_i32_1 = arith.constant 0 : i32
    return %arg0, %c0_i32, %c0_i32_0 : i32, i32, i32
  }
  func.func @transform_1(%arg0: i32) -> (i32, i32) {
    %c0_i32 = arith.constant 0 : i32
    %c0_i32_0 = arith.constant 0 : i32
    %c0_i32_1 = arith.constant 0 : i32
    return %c0_i32, %c0_i32_0 : i32, i32
  }
  func.func @transform_2(%arg0: i32) -> (i32, i32) {
    %c0_i32 = arith.constant 0 : i32
    %c0_i32_0 = arith.constant 0 : i32
    %c0_i32_1 = arith.constant 0 : i32
    return %c0_i32, %c0_i32_0 : i32, i32
  }
  func.func @transform_3(%arg0: i32) -> (i32, i32) {
    %c0_i32 = arith.constant 0 : i32
    %c0_i32_0 = arith.constant 0 : i32
    %c0_i32_1 = arith.constant 0 : i32
    return %c0_i32, %c0_i32_0 : i32, i32
  }
  func.func @transform_4(%arg0: i32) -> (i32, i32) {
    %c0_i32 = arith.constant 0 : i32
    %c0_i32_0 = arith.constant 0 : i32
    %c0_i32_1 = arith.constant 0 : i32
    return %c0_i32, %c0_i32_0 : i32, i32
  }
  func.func @transform_5(%arg0: i32) -> (i32, i32) {
    %c0_i32 = arith.constant 0 : i32
    %c0_i32_0 = arith.constant 0 : i32
    %c0_i32_1 = arith.constant 0 : i32
    return %c0_i32, %c0_i32_0 : i32, i32
  }
  func.func @transform_6(%arg0: i32) -> (i32, i32) {
    %c0_i32 = arith.constant 0 : i32
    %c0_i32_0 = arith.constant 0 : i32
    %c0_i32_1 = arith.constant 0 : i32
    return %c0_i32, %c0_i32_0 : i32, i32
  }
  func.func @transform_7(%arg0: i32) -> (i32, i32) {
    %c0_i32 = arith.constant 0 : i32
    %c0_i32_0 = arith.constant 0 : i32
    %c0_i32_1 = arith.constant 0 : i32
    return %c0_i32, %c0_i32_0 : i32, i32
  }
  func.func @transform_8(%arg0: i32) -> (i32, i32, i32) {
    %c0_i32 = arith.constant 0 : i32
    %c0_i32_0 = arith.constant 0 : i32
    %c0_i32_1 = arith.constant 0 : i32
    return %arg0, %c0_i32, %c0_i32_0 : i32, i32, i32
  }
  func.func @transform_9(%arg0: i32) -> (i32, i32) {
    %c0_i32 = arith.constant 0 : i32
    %c0_i32_0 = arith.constant 0 : i32
    %c0_i32_1 = arith.constant 0 : i32
    return %c0_i32, %c0_i32_0 : i32, i32
  }
  func.func @transform_10(%arg0: i32) -> (i32, i32) {
    %c0_i32 = arith.constant 0 : i32
    %c0_i32_0 = arith.constant 0 : i32
    %c0_i32_1 = arith.constant 0 : i32
    return %c0_i32, %c0_i32_0 : i32, i32
  }
}

</mosaic_0001>

<bundles_post_ra>
// kernel: controller_rollout.1
= control target key start
LH: loop header
LB: loop body
LE: loop exit
PB: predicated region body
PF: predicated region fallthrough
CT: control target
= control target key end

     0   :  { %16 = vsyncpa [#allocation3], 0  ;;  %s1454_s0 = inlined_call_operand.vmem [shape: f32[8,8,32], index: 0, kind: input, shape index: {}]   ;;  %s1455_s1 = inlined_call_operand.vmem [shape: f32[8,128], index: 1, kind: input, shape index: {}, may-alias: {1,9}]   ;;  %s1456_s2 = inlined_call_operand.vmem [shape: f32[8,128], index: 2, kind: input, shape index: {}, may-alias: {2,10}]   ;;  %s1457_s3 = inlined_call_operand.hbm [shape: f32[32,512], index: 3, kind: input, shape index: {}]   ;;  %s1458_s4 = inlined_call_operand.hbm [shape: f32[128,512], index: 4, kind: input, shape index: {}]   ;;  %s1459_s5 = inlined_call_operand.vmem [shape: f32[1,512], index: 5, kind: input, shape index: {}]   ;;  %s1460_s6 = inlined_call_operand.hbm [shape: f32[128,128], index: 6, kind: input, shape index: {}]   ;;  %s1461_s7 = inlined_call_operand.vmem [shape: f32[1,128], index: 7, kind: input, shape index: {}]   ;;  %s1462_s8 = inlined_call_operand.vmem [shape: f32[8,8,128], index: 8, kind: output, shape index: {0}]   ;;  %s1463_s9 = inlined_call_operand.vmem [shape: f32[8,128], index: 9, kind: output, shape index: {1}, may-alias: {1,9}]   ;;  %s1464_s10 = inlined_call_operand.vmem [shape: f32[8,128], index: 10, kind: output, shape index: {2}, may-alias: {2,10}]  }
   0x1   :  { %17 = vsyncpa [#allocation5], 0  ;;  %s1308_s13 = smov 0  }
   0x2 LB: > { %s1314_s14 = sadd.s32 4294967295, %s1242_s13   ;;  %p1017_p0 = scmp.ge.s32.totalorder %s1242_s13, 1  ;;  %s1242_s13 = sphi %s1308_s13, %s23_s13  }
   0x3   : > { %p269_p1 = scmp.lt.s32.totalorder %s1242_s13, 9  ;;  %p1018_p2 = scmp.ne.s32.totalorder %s1314_s14, 0 }
   0x4   : > { %p1111_p3 = scmp.eq.s32.totalorder %s1314_s14, 0  ;;  %s1244_s16 = smov [#allocation4]  }
   0x5   : > { %p1320_p4 = pnand %p1017_p0, %p269_p1  ;;  %s300_s17 = sshll.u32 %s1244_s16, 4  ;;  %s301_s17 = int_to_ptr.vmem [resolvable:$true] %s300_s17 }
   0x6   : > { %s1245_s18 = smov [#allocation2]   ;;  %s1246_s21 = smov [#allocation6]  }
   0x7   : > { %p1101_p5 = pneg %p1320_p4  ;;  %s287_s19 = sshll.u32 %s1245_s18, 4  ;;  %s1326_s19 = int_to_ptr.vmem [resolvable:$true] %s287_s19 }
   0x8   : > { %s316_s22 = sshll.u32 %s1246_s21, 4  ;;  %s1161_s23 = scalar_lea.vmem %s301_s17, 8192  ;;  %s1334_s22 = int_to_ptr.vmem [resolvable:$true] %s316_s22 }
   0x9   : > { %p1330_p6 = pnand %p1111_p3, %p1101_p5  ;;  %p1162_p8 = scmp.ne.s32.totalorder %s301_s17, %s1161_s23 }
   0xa   : > { %p1169_p11 = scmp.lt.s32.totalorder %s301_s17, %s301_s17  ;;  %p1170_p12 = scmp.lt.s32.totalorder %s1161_s23, %s1161_s23 }
   0xb   : > { %p1152_p7 = pneg %p1330_p6 }
   0xc   : > { %p1171_p13 = por %p1170_p12, %p1169_p11 }
   0xd   : > { %p1164_p9 = pnand %p1162_p8, %p1152_p7 }
   0xf   : > { %p1165_p10 = pneg %p1164_p9 }
  0x11   : > { %p1172_p0 = pnand %p1171_p13, %p1165_p10 }
  0x13   : > { %1175 = shalt.err (!%p1172_p0)
}
  0x14   : > { %s1247_s24 = smov 512   ;;  %s1248_s25 = smov 32  }
  0x15   : > { %1107 = dma.hbm_to_vmem [thread:$0]  (!%p1330_p6), %s1458_s4, 8192, %s301_s17, [#allocation5], %s1247_s24, %s1247_s24, %s1248_s25  }
  0x16   : > { %s1187_s28 = scalar_lea.vmem %s1326_s19, 2048  ;;  %p1195_p9 = scmp.lt.s32.totalorder %s1326_s19, %s1326_s19 }
  0x17   : > { %p1188_p1 = scmp.ne.s32.totalorder %s1326_s19, %s1187_s28  ;;  %p1196_p10 = scmp.lt.s32.totalorder %s1187_s28, %s1187_s28 }
  0x19   : > { %p1190_p5 = pnand %p1188_p1, %p1152_p7  ;;  %p1197_p11 = por %p1196_p10, %p1195_p9 }
  0x1b   : > { %p1191_p8 = pneg %p1190_p5 }
  0x1d   : > { %p1198_p12 = pnand %p1197_p11, %p1191_p8 }
  0x1f   : > { %1201 = shalt.err (!%p1198_p12)
}
  0x20   : > { %1104 = dma.hbm_to_vmem [thread:$0]  (!%p1330_p6), %s1457_s3, 2048, %s1326_s19, [#allocation3], %s1247_s24, %s1247_s24, %s1248_s25  }
  0x21   : > { %s1213_s11 = scalar_lea.vmem %s1334_s22, 2048  ;;  %p1221_p5 = scmp.lt.s32.totalorder %s1334_s22, %s1334_s22 }
  0x22   : > { %p1214_p13 = scmp.ne.s32.totalorder %s1334_s22, %s1213_s11  ;;  %p1222_p8 = scmp.lt.s32.totalorder %s1213_s11, %s1213_s11 }
  0x24   : > { %p1216_p0 = pnand %p1214_p13, %p1152_p7  ;;  %p1223_p9 = por %p1222_p8, %p1221_p5 }
  0x26   : > { %p1217_p1 = pneg %p1216_p0 }
  0x28   : > { %p1224_p10 = pnand %p1223_p9, %p1217_p1 }
  0x2a   : > { %1227 = shalt.err (!%p1224_p10)
}
  0x2b   : > { %s1249_s12 = smov 128   ;;  %s1250_s16 = smov 8  }
  0x2c   : > { %1110 = dma.hbm_to_vmem [thread:$0]  (!%p1330_p6), %s1460_s6, 2048, %s1334_s22, [#allocation5], %s1249_s12, %s1249_s12, %s1250_s16  }
  0x2d   : > { %342 = sbr.rel (%p1320_p4) target bundleno = 550 (0x226), region = 52 }
  0x32   : > { %1233 = dma.done.wait (%p1111_p3), [#allocation3], 2048  }
  0x33   : > { %1235 = vsyncadd (%p1111_p3), [#allocation3], 4294965248 }
  0x34   : > { %1237 = dma.done.wait (%p1111_p3), [#allocation5], 10240  }
  0x35   : > { %1239 = vsyncadd (%p1111_p3), [#allocation5], 4294957056  ;;  %p386_p7 = scmp.lt.s32.totalorder %s1314_s14, 7 }
  0x36   : > { %397 = sbr.rel (%p1018_p2) target bundleno = 62 (0x3e), region = 68 }
  0x37   : > { %s387_s19 = scalar_select %p386_p7, %s1314_s14, 7 }
  0x39   : > { %s1026_s20 = sshll.u32 %s387_s19, 3 }
  0x3a   : > { %s1387_s22 = scalar_lea.vmem %s1454_s0, %s1026_s20  ;;  %s1392_s25 = scalar_lea.vmem %s1462_s8, %s1026_s20 }
  0x3b   : > { %v398_v0 = vld [vmem:[%s1455_s1] sm:$0xff] }
  0x3c   : > { %v400_v1 = vld [vmem:[%s1456_s2] sm:$0xff]  ;;  %399 = vst [vmem:[%s1463_s9] sm:$0xff] %v398_v0 }
  0x3d   : > { %401 = vst [vmem:[%s1464_s10] sm:$0xff] %v400_v1 }
  0x3e PF: > { %v484_v2 = vld [vmem:[#allocation4 + $0x1f8] sm:$0xff]  ;;  %v483_v3 = vld [vmem:[#allocation4 + $0x1f0] sm:$0xff]  ;;  %v1251_v6 = vmov 0.0   ;;  %v482_v8 = vld [vmem:[#allocation4 + $0x1e8] sm:$0xff]  ;;  %vm628_vm0 = vcmask 261120   ;;  %vm1252_vm1 = vmmov 0  }
  0x3f   : > { %v480_v4 = vld [vmem:[#allocation4 + $0x1d8] sm:$0xff]  ;;  %557 = vmatprep.subr.mxu1 %v484_v2  ;;  %v479_v5 = vld [vmem:[#allocation4 + $0x1d0] sm:$0xff]  ;;  %621 = vmatprep.mubr.f32.mxu1 %v1251_v6  ;;  %v481_v9 = vld [vmem:[#allocation4 + $0x1e0] sm:$0xff] }
  0x40   : > { %558 = vmatpush1.msra.mxu1 %v483_v3  ;;  %v476_v7 = vld [vmem:[#allocation4 + $0x1b8] sm:$0xff]  ;;  %550 = vmatprep.mubr.f32.mxu0 %v1251_v6  ;;  %v475_v10 = vld [vmem:[#allocation4 + $0x1b0] sm:$0xff]  ;;  %v478_v11 = vld [vmem:[#allocation4 + $0x1c8] sm:$0xff] }
  0x41   : > { %559 = vmatprep.subr.mxu1 %v480_v4  ;;  %486 = vmatprep.subr.mxu0 %v482_v8  ;;  %v472_v12 = vld [vmem:[#allocation4 + $0x198] sm:$0xff]  ;;  %v477_v13 = vld [vmem:[#allocation4 + $0x1c0] sm:$0xff]  ;;  %v474_v14 = vld [vmem:[#allocation4 + $0x1a8] sm:$0xff] }
  0x42   : > { %560 = vmatpush1.msra.mxu1 %v479_v5  ;;  %487 = vmatpush1.msra.mxu0 %v481_v9  ;;  %v471_v15 = vld [vmem:[#allocation4 + $0x190] sm:$0xff]  ;;  %v473_v16 = vld [vmem:[#allocation4 + $0x1a0] sm:$0xff]  ;;  %v468_v17 = vld [vmem:[#allocation4 + $0x178] sm:$0xff] }
  0x43   : > { %561 = vmatprep.subr.mxu1 %v476_v7  ;;  %488 = vmatprep.subr.mxu0 %v478_v11  ;;  %v470_v18 = vld [vmem:[#allocation4 + $0x188] sm:$0xff]  ;;  %v467_v19 = vld [vmem:[#allocation4 + $0x170] sm:$0xff]  ;;  %v469_v20 = vld [vmem:[#allocation4 + $0x180] sm:$0xff] }
  0x44   : > { %562 = vmatpush1.msra.mxu1 %v475_v10  ;;  %489 = vmatpush1.msra.mxu0 %v477_v13  ;;  %v464_v21 = vld [vmem:[#allocation4 + $0x158] sm:$0xff]  ;;  %v466_v22 = vld [vmem:[#allocation4 + $0x168] sm:$0xff]  ;;  %v463_v23 = vld [vmem:[#allocation4 + $0x150] sm:$0xff] }
  0x45   : > { %563 = vmatprep.subr.mxu1 %v472_v12  ;;  %490 = vmatprep.subr.mxu0 %v474_v14  ;;  %v465_v24 = vld [vmem:[#allocation4 + $0x160] sm:$0xff]  ;;  %v460_v25 = vld [vmem:[#allocation4 + $0x138] sm:$0xff]  ;;  %v462_v26 = vld [vmem:[#allocation4 + $0x148] sm:$0xff] }
  0x46   : > { %564 = vmatpush1.msra.mxu1 %v471_v15  ;;  %491 = vmatpush1.msra.mxu0 %v473_v16  ;;  %v459_v27 = vld [vmem:[#allocation4 + $0x130] sm:$0xff]  ;;  %v461_v28 = vld [vmem:[#allocation4 + $0x140] sm:$0xff]  ;;  %v456_v29 = vld [vmem:[#allocation4 + $0x118] sm:$0xff] }
  0x47   : > { %565 = vmatprep.subr.mxu1 %v468_v17  ;;  %492 = vmatprep.subr.mxu0 %v470_v18  ;;  %v458_v30 = vld [vmem:[#allocation4 + $0x128] sm:$0xff]  ;;  %v455_v31 = vld [vmem:[#allocation4 + $0x110] sm:$0xff]  ;;  %v457_v32 = vld [vmem:[#allocation4 + $0x120] sm:$0xff] }
  0x48   : > { %566 = vmatpush1.msra.mxu1 %v467_v19  ;;  %493 = vmatpush1.msra.mxu0 %v469_v20  ;;  %v452_v33 = vld [vmem:[#allocation4 + $0xf8] sm:$0xff]  ;;  %v454_v34 = vld [vmem:[#allocation4 + $0x108] sm:$0xff]  ;;  %v451_v35 = vld [vmem:[#allocation4 + $0xf0] sm:$0xff] }
  0x49   : > { %567 = vmatprep.subr.mxu1 %v464_v21  ;;  %494 = vmatprep.subr.mxu0 %v466_v22  ;;  %v453_v36 = vld [vmem:[#allocation4 + $0x100] sm:$0xff]  ;;  %v448_v37 = vld [vmem:[#allocation4 + $0xd8] sm:$0xff]  ;;  %v450_v38 = vld [vmem:[#allocation4 + $0xe8] sm:$0xff] }
  0x4a   : > { %568 = vmatpush1.msra.mxu1 %v463_v23  ;;  %495 = vmatpush1.msra.mxu0 %v465_v24  ;;  %v447_v39 = vld [vmem:[#allocation4 + $0xd0] sm:$0xff]  ;;  %v449_v40 = vld [vmem:[#allocation4 + $0xe0] sm:$0xff]  ;;  %v444_v41 = vld [vmem:[#allocation4 + $0xb8] sm:$0xff] }
  0x4b   : > { %569 = vmatprep.subr.mxu1 %v460_v25  ;;  %496 = vmatprep.subr.mxu0 %v462_v26  ;;  %v446_v42 = vld [vmem:[#allocation4 + $0xc8] sm:$0xff]  ;;  %v443_v43 = vld [vmem:[#allocation4 + $0xb0] sm:$0xff]  ;;  %v445_v44 = vld [vmem:[#allocation4 + $0xc0] sm:$0xff] }
  0x4c   : > { %570 = vmatpush1.msra.mxu1 %v459_v27  ;;  %497 = vmatpush1.msra.mxu0 %v461_v28  ;;  %v440_v45 = vld [vmem:[#allocation4 + $0x98] sm:$0xff]  ;;  %v442_v46 = vld [vmem:[#allocation4 + $0xa8] sm:$0xff]  ;;  %v439_v47 = vld [vmem:[#allocation4 + $0x90] sm:$0xff] }
  0x4d   : > { %571 = vmatprep.subr.mxu1 %v456_v29  ;;  %498 = vmatprep.subr.mxu0 %v458_v30  ;;  %v441_v48 = vld [vmem:[#allocation4 + $0xa0] sm:$0xff]  ;;  %v436_v49 = vld [vmem:[#allocation4 + $0x78] sm:$0xff]  ;;  %v438_v50 = vld [vmem:[#allocation4 + $0x88] sm:$0xff] }
  0x4e   : > { %572 = vmatpush1.msra.mxu1 %v455_v31  ;;  %499 = vmatpush1.msra.mxu0 %v457_v32  ;;  %v435_v51 = vld [vmem:[#allocation4 + $0x70] sm:$0xff]  ;;  %v437_v52 = vld [vmem:[#allocation4 + $0x80] sm:$0xff]  ;;  %v432_v53 = vld [vmem:[#allocation4 + $0x58] sm:$0xff] }
  0x4f   : > { %573 = vmatprep.subr.mxu1 %v452_v33  ;;  %500 = vmatprep.subr.mxu0 %v454_v34  ;;  %v434_v54 = vld [vmem:[#allocation4 + $0x68] sm:$0xff]  ;;  %v431_v55 = vld [vmem:[#allocation4 + $0x50] sm:$0xff]  ;;  %v433_v56 = vld [vmem:[#allocation4 + $0x60] sm:$0xff] }
  0x50   : > { %574 = vmatpush1.msra.mxu1 %v451_v35  ;;  %501 = vmatpush1.msra.mxu0 %v453_v36  ;;  %v428_v57 = vld [vmem:[#allocation4 + $0x38] sm:$0xff]  ;;  %v430_v58 = vld [vmem:[#allocation4 + $0x48] sm:$0xff]  ;;  %v427_v59 = vld [vmem:[#allocation4 + $0x30] sm:$0xff] }
  0x51   : > { %575 = vmatprep.subr.mxu1 %v448_v37  ;;  %502 = vmatprep.subr.mxu0 %v450_v38  ;;  %v429_v60 = vld [vmem:[#allocation4 + $0x40] sm:$0xff]  ;;  %v424_v61 = vld [vmem:[#allocation4 + $0x18] sm:$0xff]  ;;  %v426_v62 = vld [vmem:[#allocation4 + $0x28] sm:$0xff]  ;;  %v775_v38 = vlaneseq }
  0x52   : > { %576 = vmatpush1.msra.mxu1 %v447_v39  ;;  %503 = vmatpush1.msra.mxu0 %v449_v40  ;;  %v423_v63 = vld [vmem:[#allocation4 + $0x10] sm:$0xff]  ;;  %v425_v0 = vld [vmem:[#allocation4 + $0x20] sm:$0xff]  ;;  %v418_v2 = vld [vmem:[#allocation2 + $0x68] sm:$0xff] }
  0x53   : > { %577 = vmatprep.subr.mxu1 %v444_v41  ;;  %504 = vmatprep.subr.mxu0 %v446_v42  ;;  %v403_v1 = vld [vmem:[%s1463_s9] sm:$0xff]  ;;  %v422_v4 = vld [vmem:[#allocation4 + $0x8] sm:$0xff]  ;;  %v420_v14 = vld [vmem:[#allocation2 + $0x78] sm:$0xff]  ;;  %v776_v39 = vshrl.u32 %v775_v38, 7 }
  0x54   : > { %578 = vmatpush1.msra.mxu1 %v443_v43  ;;  %505 = vmatpush1.msra.mxu0 %v445_v44  ;;  %v417_v3 = vld [vmem:[#allocation2 + $0x60] sm:$0xff]  ;;  %v414_v5 = vld [vmem:[#allocation2 + $0x48] sm:$0xff]  ;;  %v419_v15 = vld [vmem:[#allocation2 + $0x70] sm:$0xff] }
  0x55   : > { %579 = vmatprep.subr.mxu1 %v440_v45  ;;  %506 = vmatprep.subr.mxu0 %v442_v46  ;;  %v421_v7 = vld [vmem:[#allocation4] sm:$0xff]  ;;  %v410_v9 = vld [vmem:[#allocation2 + $0x28] sm:$0xff]  ;;  %v416_v16 = vld [vmem:[#allocation2 + $0x58] sm:$0xff]  ;;  %v777_v41 = vsub.s32 0, %v776_v39  ;;  %v781_v43 = vsub.s32 1, %v776_v39 }
  0x56   : > { %580 = vmatpush1.msra.mxu1 %v439_v47  ;;  %507 = vmatpush1.msra.mxu0 %v441_v48  ;;  %v413_v8 = vld [vmem:[#allocation2 + $0x40] sm:$0xff]  ;;  %v406_v11 = vld [vmem:[#allocation2 + $0x8] sm:$0xff]  ;;  %v415_v17 = vld [vmem:[#allocation2 + $0x50] sm:$0xff] }
  0x57   : > { %581 = vmatprep.subr.mxu1 %v436_v49  ;;  %508 = vmatprep.subr.mxu0 %v438_v50  ;;  %v409_v10 = vld [vmem:[#allocation2 + $0x20] sm:$0xff]  ;;  %v412_v18 = vld [vmem:[#allocation2 + $0x38] sm:$0xff]  ;;  %v411_v19 = vld [vmem:[#allocation2 + $0x30] sm:$0xff] }
  0x58   : > { %582 = vmatpush1.msra.mxu1 %v435_v51  ;;  %509 = vmatpush1.msra.mxu0 %v437_v52  ;;  %v405_v12 = vld [vmem:[#allocation2] sm:$0xff]  ;;  %v408_v20 = vld [vmem:[#allocation2 + $0x18] sm:$0xff]  ;;  %v407_v21 = vld [vmem:[#allocation2 + $0x10] sm:$0xff] }
  0x59   : > { %583 = vmatprep.subr.mxu1 %v432_v53  ;;  %510 = vmatprep.subr.mxu0 %v434_v54  ;;  %v402_v13 = vld [vmem:[%s1387_s22] sm:$0xff]  ;;  %v840_v22 = vld [vmem:[#allocation6 + $0x78] sm:$0xff]  ;;  %v839_v23 = vld [vmem:[#allocation6 + $0x70] sm:$0xff] }
  0x5a   : > { %584 = vmatpush1.msra.mxu1 %v431_v55  ;;  %511 = vmatpush1.msra.mxu0 %v433_v56  ;;  %v838_v24 = vld [vmem:[#allocation6 + $0x68] sm:$0xff]  ;;  %v837_v25 = vld [vmem:[#allocation6 + $0x60] sm:$0xff]  ;;  %v836_v26 = vld [vmem:[#allocation6 + $0x58] sm:$0xff]  ;;  %v789_v55 = vsub.s32 3, %v776_v39 }
  0x5b   : > { %585 = vmatprep.subr.mxu1 %v428_v57  ;;  %512 = vmatprep.subr.mxu0 %v430_v58  ;;  %v835_v27 = vld [vmem:[#allocation6 + $0x50] sm:$0xff]  ;;  %v834_v28 = vld [vmem:[#allocation6 + $0x48] sm:$0xff]  ;;  %v833_v29 = vld [vmem:[#allocation6 + $0x40] sm:$0xff] }
  0x5c   : > { %586 = vmatpush1.msra.mxu1 %v427_v59  ;;  %513 = vmatpush1.msra.mxu0 %v429_v60  ;;  %v832_v30 = vld [vmem:[#allocation6 + $0x38] sm:$0xff]  ;;  %v831_v31 = vld [vmem:[#allocation6 + $0x30] sm:$0xff]  ;;  %v830_v32 = vld [vmem:[#allocation6 + $0x28] sm:$0xff] }
  0x5d   : > { %587 = vmatprep.subr.mxu1 %v424_v61  ;;  %514 = vmatprep.subr.mxu0 %v426_v62  ;;  %v829_v33 = vld [vmem:[#allocation6 + $0x20] sm:$0xff]  ;;  %v828_v34 = vld [vmem:[#allocation6 + $0x18] sm:$0xff]  ;;  %v827_v35 = vld [vmem:[#allocation6 + $0x10] sm:$0xff]  ;;  %v785_v61 = vsub.s32 2, %v776_v39 }
  0x5e   : > { %588 = vmatpush1.msra.mxu1 %v423_v63  ;;  %515 = vmatpush1.msra.mxu0 %v425_v0  ;;  %v826_v36 = vld [vmem:[#allocation6 + $0x8] sm:$0xff]  ;;  %v825_v37 = vld [vmem:[#allocation6] sm:$0xff] }
  0x5f   : > { %622 = vmatmul.mubr.f32.vlgmr.msra.gmra.mxu1 %v403_v1  ;;  %656 = vmatprep.subr.mxu1 %v418_v2  ;;  %v485_v42 = vld [vmem:[%s1459_s5] sm:$0xf] }
  0x60   : > { %657 = vmatpush1.msra.mxu1 %v417_v3  ;;  %516 = vmatprep.subr.mxu0 %v422_v4  ;;  %v778_v46 = vrot.slane %v485_v42, %v777_v41  ;;  %v782_v49 = vrot.slane %v485_v42, %v781_v43  ;;  %v790_v59 = vrot.slane %v485_v42, %v789_v55 }
  0x61   : > { %658 = vmatprep.subr.mxu1 %v414_v5  ;;  %517 = vmatpush1.msra.mxu0 %v421_v7  ;;  %v786_v0 = vrot.slane %v485_v42, %v785_v61 }
  0x62   : > { %659 = vmatpush1.msra.mxu1 %v413_v8  ;;  %551 = vmatmul.mubr.f32.vlgmr.msra.gmra.mxu0 %v403_v1 }
  0x63   : > { %660 = vmatprep.subr.mxu1 %v410_v9  ;;  %696 = vmatprep.mubr.f32.mxu1 %v1251_v6 }
  0x64   : > { %661 = vmatpush1.msra.mxu1 %v409_v10  ;;  %1054 = vmatprep.subr.mxu0 %v1251_v6  ;;  %v404_v10 = vld [vmem:[%s1464_s10] sm:$0xff] }
  0x65   : > { %662 = vmatprep.subr.mxu1 %v406_v11  ;;  %1055 = vmatpush3.msra.mxu0 %v840_v22 }
  0x66   : > { %663 = vmatpush1.msra.mxu1 %v405_v12  ;;  %1056 = vmatprep.subr.mxu0 %v1251_v6 }
  0x67   : > { %1029 = vmatmul.mubr.msk.f32.vlgmr.msra.gmra.mxu1 %vm628_vm0, %v402_v13  ;;  %727 = vmatprep.subr.mxu1 %v420_v14 }
  0x68   : > { %728 = vmatpush1.msra.mxu1 %v419_v15  ;;  %767 = vmatprep.mubr.f32.mxu1 %v1251_v6 }
  0x69   : > { %729 = vmatprep.subr.mxu1 %v416_v16  ;;  %1057 = vmatpush3.msra.mxu0 %v839_v23 }
  0x6a   : > { %730 = vmatpush1.msra.mxu1 %v415_v17  ;;  %1058 = vmatprep.subr.mxu0 %v1251_v6 }
  0x6b   : > { %731 = vmatprep.subr.mxu1 %v412_v18  ;;  %1059 = vmatpush3.msra.mxu0 %v838_v24 }
  0x6c   : > { %732 = vmatpush1.msra.mxu1 %v411_v19  ;;  %1060 = vmatprep.subr.mxu0 %v1251_v6 }
  0x6d   : > { %733 = vmatprep.subr.mxu1 %v408_v20  ;;  %1061 = vmatpush3.msra.mxu0 %v837_v25  ;;  %v1034_v20 = vld [vmem:[%s1461_s7] ss:$0 sm:$0xff] }
  0x6e   : > { %734 = vmatpush1.msra.mxu1 %v407_v21  ;;  %1062 = vmatprep.subr.mxu0 %v1251_v6 }
  0x6f   : > { %1030 = vmatmul.mubr.msk.f32.vlgmr.msra.gmra.mxu1 %vm628_vm0, %v402_v13  ;;  %1063 = vmatpush3.msra.mxu0 %v836_v26 }
  0x70   : > { %1064 = vmatprep.subr.mxu0 %v1251_v6  ;;  %1086 = vmatprep.mubr.msk.f32.mxu0 %vm1252_vm1, %v1251_v6 }
  0x71   : > { %1065 = vmatpush3.msra.mxu0 %v835_v27 }
  0x72   : > { %1066 = vmatprep.subr.mxu0 %v1251_v6 }
  0x73   : > { %1067 = vmatpush3.msra.mxu0 %v834_v28 }
  0x74   : > { %1068 = vmatprep.subr.mxu0 %v1251_v6 }
  0x75   : > { %1069 = vmatpush3.msra.mxu0 %v833_v29 }
  0x76   : > { %1070 = vmatprep.subr.mxu0 %v1251_v6 }
  0x77   : > { %1071 = vmatpush3.msra.mxu0 %v832_v30 }
  0x78   : > { %1072 = vmatprep.subr.mxu0 %v1251_v6 }
  0x79   : > { %1073 = vmatpush3.msra.mxu0 %v831_v31 }
  0x7a   : > { %1074 = vmatprep.subr.mxu0 %v1251_v6 }
  0x7b   : > { %1075 = vmatpush3.msra.mxu0 %v830_v32 }
  0x7c   : > { %1076 = vmatprep.subr.mxu0 %v1251_v6 }
  0x7d   : > { %1077 = vmatpush3.msra.mxu0 %v829_v33 }
  0x7e   : > { %1078 = vmatprep.subr.mxu0 %v1251_v6 }
  0x7f   : > { %1079 = vmatpush3.msra.mxu0 %v828_v34 }
  0x80   : > { %1080 = vmatprep.subr.mxu0 %v1251_v6 }
  0x81   : > { %1081 = vmatpush3.msra.mxu0 %v827_v35 }
  0x82   : > { %1082 = vmatprep.subr.mxu0 %v1251_v6 }
  0x83   : > { %1083 = vmatpush3.msra.mxu0 %v826_v36 }
  0x84   : > { %1084 = vmatprep.subr.mxu0 %v1251_v6 }
  0x85   : > { %1085 = vmatpush3.msra.mxu0 %v825_v37 }
 0x11f   : > { %v623_v40 = vpop.f32.mrf.mxu1 }
 0x121   : > { %v625_v44 = vpop.f32.mrf.mxu1 }
 0x122   : > { %v552_v45 = vpop.f32.mrf.mxu0 }
 0x124   : > { %v554_v50 = vpop.f32.mrf.mxu0 }
 0x127   : > { %v698_v47 = vpop.f32.mrf.mxu1 }
 0x128   : > { %v699_v48 = vadd.f32 %v698_v47, %v552_v45 }
 0x129   : > { %v700_v51 = vpop.f32.mrf.mxu1 }
 0x12a   : > { %v795_v52 = vadd.f32 %v778_v46, %v699_v48  ;;  %v701_v6 = vadd.f32 %v700_v51, %v554_v50 }
 0x12c   : > { %v1031_v53 = vmul.f32 -1.442695, %v795_v52  ;;  %v796_v54 = vadd.f32 %v782_v49, %v701_v6 }
 0x12e   : > { %1134 = vpow2.f32 %v1031_v53  ;;  %v1032_v56 = vmul.f32 -1.442695, %v796_v54 }
 0x12f   : > { %v769_v57 = vpop.f32.mrf.mxu1 }
 0x130   : > { %1136 = vpow2.f32 %v1032_v56  ;;  %v770_v63 = vadd.f32 %v769_v57, %v623_v40 }
 0x131   : > { %v771_v58 = vpop.f32.mrf.mxu1 }
 0x132   : > { %v772_v60 = vadd.f32 %v771_v58, %v625_v44  ;;  %v797_v3 = vadd.f32 %v786_v0, %v770_v63 }
 0x134   : > { %v798_v62 = vadd.f32 %v790_v59, %v772_v60 }
 0x136   : > { %v1033_v1 = vmul.f32 -1.442695, %v798_v62 }
 0x138   : > { %1138 = vpow2.f32 %v1033_v1 }
 0x13b   : > { %v1135_v2 = vpop.eup %1134 }
 0x13c   : > { %v802_v4 = vadd.f32 1.0, %v1135_v2 }
 0x13d   : > { %v1137_v5 = vpop.eup %1136 }
 0x13e   : > { %1140 = vrcp.f32 %v802_v4  ;;  %v808_v7 = vadd.f32 1.0, %v1137_v5 }
 0x13f   : > { %1142 = vtanh.f32 %v797_v3 }
 0x140   : > { %1144 = vrcp.f32 %v808_v7 }
 0x145   : > { %v1139_v8 = vpop.eup %1138 }
 0x146   : > { %v815_v13 = vadd.f32 1.0, %v1139_v8 }
 0x148   : > { %1146 = vrcp.f32 %v815_v13 }
 0x14b   : > { %v1141_v9 = vpop.eup %1140 }
 0x14c   : > { %v1143_v11 = vpop.eup %1142 }
 0x14d   : > { %v1145_v12 = vpop.eup %1144  ;;  %v819_v15 = vmul.f32 %v1143_v11, %v1141_v9 }
 0x14e   : > { %v818_v14 = vmul.f32 %v1145_v12, %v404_v10 }
 0x150   : > { %v820_v16 = vadd.f32 %v819_v15, %v818_v14 }
 0x152   : > { %1148 = vtanh.f32 %v820_v16  ;;  %824 = vst [vmem:[%s1464_s10] sm:$0xff] %v820_v16 }
 0x155   : > { %v1147_v17 = vpop.eup %1146 }
 0x15f   : > { %v1149_v18 = vpop.eup %1148 }
 0x160   : > { %v822_v19 = vmul.f32 %v1149_v18, %v1147_v17 }
 0x162   : > { %823 = vst [vmem:[%s1463_s9] sm:$0xff] %v822_v19  ;;  %1087 = vmatmul.mubr.f32.vlgmr.msra.gmra.mxu0 %v822_v19 }
 0x222   : > { %v914_v21 = vpop.f32.mrf.mxu0 }
 0x223   : > { %v915_v22 = vadd.f32 %v1034_v20, %v914_v21 }
 0x224   : > { %v1088_v23 = vpop.f32.mrf.mxu0 }
 0x225   : > { %918 = vst [vmem:[%s1392_s25] sm:$0xff] %v915_v22 }
 0x226 PF: > { %s23_s13 = sadd.s32 1, %s1242_s13  }
 0x227   : > { %p20_p2 = scmp.ge.s32.totalorder %s23_s13, 10  }
 0x229   :  { %22 = sbr.rel (!%p20_p2) target bundleno = 2 (0x2), region = 115 }
 0x22e   :  { %950 = vsyncpa [#allocation3], 1 }
 0x22f   :  { %952 = vsyncpa [#allocation3 + $0x1], 1 }
 0x230   :  { %953 = vsyncpa [#allocation5], 1 }

</bundles_post_ra>
